<compile_context>
chip_gen: v5e
topology: v5e:2x2
jax: 0.10.0
libtpu: 0.0.40
codegen_flags: <defaults>
</compile_context>

<pallas_src>
import functools

import jax
import jax.numpy as jnp
from jax.experimental import pallas as pl
from jax.experimental.pallas import tpu as pltpu


def _leaky_relu(x, slope=0.01):
    return jnp.where(x > 0, x, slope * x)


def _round_up(x, m):
    return ((x + m - 1) // m) * m


# -----------------------------------------------------------------------------
# Kernel
# -----------------------------------------------------------------------------
def _similarity_kernel(
    # ---- inputs -----------------------------------------------------------
    x_ref,           # VMEM [Np, F]  bf16  node features (zero-padded rows)
    mh_ref,          # VMEM [TN, Np] bf16  streamed row-block of mh = sum_r w_r adj_r + transpose
    mhb_ref,         # VMEM [Bp, Np] bf16  mh[:Bp, :] (resident, for hop-2)
    tweets_ref,      # VMEM [Bp, T]  f32
    gc_w0_ref, gc_b0_ref,   # [F, H] bf16, [1, H] f32
    gc_w1_ref, gc_b1_ref,   # [H, H] bf16, [1, H] f32
    pe_w0_ref, pe_b0_ref,   # [F, H] f32,  [1, H] f32
    pe_w1_ref, pe_b1_ref,   # [H, H] f32,  [1, H] f32
    bc_wg_ref, bc_wp_ref, bc_wt_ref, bc_b0_ref,  # [H,H], [H,H], [T,H], [1,H] f32
    bc_w1_ref, bc_b1_ref,   # [H, 128], [1, 128] f32 (zero padded past column 2)
    # ---- output -----------------------------------------------------------
    out_ref,         # VMEM [Bp, 128] f32  softmax probs in columns [:2]
    # ---- scratch ----------------------------------------------------------
    g0_ref,          # VMEM [Np, H] f32   g0 rows (written block-by-block, no RMW)
    s0_ref,          # VMEM [Np, H] bf16  s0 = x @ W0
    *, tile_n, batch_pad,
):
    i = pl.program_id(0)
    TN = tile_n
    Bp = batch_pad

    # ---- step 0: s0 = x @ W0 once (bf16 x bf16, f32 accumulation) ----------
    @pl.when(i == 0)
    def _init():
        s0_ref[...] = jnp.dot(
            x_ref[...], gc_w0_ref[...],
            preferred_element_type=jnp.float32).astype(s0_ref.dtype)

    # ---- graph hop 1 on the current (already symmetrized) adjacency block --
    # mh is symmetric, so this single matmul produces these g0 rows completely.
    row0 = pl.multiple_of(i * TN, TN)
    g0_blk = jnp.dot(mh_ref[...], s0_ref[...],
                     preferred_element_type=jnp.float32) + gc_b0_ref[...]
    g0_ref[pl.ds(row0, TN), :] = g0_blk

    # ---- last step: hop 2 (B rows only) + property embedding + classifier --
    @pl.when(i == pl.num_programs(0) - 1)
    def _finalize():
        g0_all = g0_ref[...]                                   # [Np, H] f32
        s1 = jnp.dot(g0_all.astype(jnp.bfloat16), gc_w1_ref[...],
                     preferred_element_type=jnp.float32)       # [Np, H] f32
        g1 = jnp.dot(mhb_ref[...], s1.astype(jnp.bfloat16),
                     preferred_element_type=jnp.float32) + gc_b1_ref[...]  # [Bp, H]

        graph_emb = 0.5 * (g0_ref[pl.ds(0, Bp), :] + g1)       # mean of the two GC layers

        # PropertyEmbedding on the first B rows of x
        up = x_ref[pl.ds(0, Bp), :].astype(jnp.float32)
        h = _leaky_relu(jnp.dot(up, pe_w0_ref[...],
                                preferred_element_type=jnp.float32) + pe_b0_ref[...])
        prop = jnp.dot(h, pe_w1_ref[...],
                       preferred_element_type=jnp.float32) + pe_b1_ref[...]

        # BotClassifier: concat([graph_emb, prop, tweets]) @ Wc0 == 3 partial matmuls
        hid = (jnp.dot(graph_emb, bc_wg_ref[...], preferred_element_type=jnp.float32)
               + jnp.dot(prop, bc_wp_ref[...], preferred_element_type=jnp.float32)
               + jnp.dot(tweets_ref[...], bc_wt_ref[...], preferred_element_type=jnp.float32)
               + bc_b0_ref[...])
        hid = _leaky_relu(hid)

        logits = jnp.dot(hid, bc_w1_ref[...],
                         preferred_element_type=jnp.float32) + bc_b1_ref[...]
        logits = _leaky_relu(logits)                           # [Bp, 128]

        # softmax over the 2 real classes (padded lanes masked out)
        lane = jax.lax.broadcasted_iota(jnp.int32, logits.shape, 1)
        logits = jnp.where(lane < 2, logits, -jnp.inf)
        m = jnp.max(logits, axis=-1, keepdims=True)
        e = jnp.exp(logits - m)
        out_ref[...] = (e / jnp.sum(e, axis=-1, keepdims=True)).astype(out_ref.dtype)


# -----------------------------------------------------------------------------
# Wrapper-side preprocessing (hoistable when the graph is static)
# -----------------------------------------------------------------------------
def combine_adjacency(adj_matrix, relation_weight, n_pad, batch_pad):
    """mh = sum_r w_r * adj[..., r];  mh = mh + mh.T  (f32 accumulate -> bf16, zero padded).

    Returns (mh_padded [n_pad, n_pad], mh_rows_b [batch_pad, n_pad]).  When the graph
    is static, call this once and pass the result via `precombined=` so the per-call
    path does not re-read all R*N*N f32 adjacency bytes.
    """
    n = adj_matrix.shape[0]
    w = relation_weight.reshape(-1).astype(jnp.float32)
    a = jnp.einsum("ijr,r->ij", adj_matrix.astype(jnp.float32), w)
    mh = a + a.T                                              # symmetric, f32 accumulate
    mh_p = jnp.zeros((n_pad, n_pad), jnp.bfloat16).at[:n, :n].set(mh.astype(jnp.bfloat16))
    return mh_p, mh_p[:batch_pad, :]


def _pick_tiling(n_nodes, batch_pad, feat_dim, hidden_dim, requested_tile_n=None):
    """Choose (TN, vmem_limit_bytes) from the chip's VMEM capacity."""
    try:
        cap = int(pltpu.get_tpu_info().vmem_capacity_bytes)
    except Exception:
        cap = 64 * 1024 * 1024                 # conservative (v7x-sized) fallback
    if cap >= 96 * 1024 * 1024:                # v5e / v6e: 128 MiB physical VMEM
        tn, limit = 512, 96 * 1024 * 1024
    else:                                      # v7x: 64 MiB physical VMEM
        tn, limit = 128, 52 * 1024 * 1024

    np_est = _round_up(n_nodes, 128)           # lane-dense last dim
    if requested_tile_n is not None:
        tn = max(128, _round_up(int(requested_tile_n), 128))
    tn = min(tn, np_est)

    def footprint(t):
        return (2 * t * np_est * 2                     # double-buffered streamed mh block (bf16)
                + 2 * batch_pad * np_est * 2           # resident mh[:Bp, :]
                + np_est * hidden_dim * (4 + 2)        # g0 (f32) + s0 (bf16) scratch
                + 2 * np_est * feat_dim * 2)           # resident x (bf16)

    while tn > 128 and footprint(tn) > limit - (8 << 20):
        tn = max(128, (tn // 2) // 128 * 128)
    return tn, limit


def similarity_model(x_feature, adj_matrix, des, tweets, batch_size, params,
                     *, tile_n=None, precombined=None):
    """Layout plumbing in plain JAX; all compute in one pipelined Pallas kernel."""
    del des  # unused by the PyTorch forward as well
    N, F = int(x_feature.shape[0]), int(x_feature.shape[1])
    H = int(params["gc_w1"].shape[0])
    T = int(tweets.shape[-1])
    B = int(batch_size)
    assert B <= N

    f32, bf16 = jnp.float32, jnp.bfloat16

    Bp = _round_up(max(B, 16), 16)                   # bf16-sublane aligned batch pad
    TN, vmem_limit = _pick_tiling(N, Bp, F, H, tile_n)
    Np = _round_up(N, TN)                            # padded node count (multiple of 128)
    KB = Np // TN                                    # grid size

    # relation-combined + symmetrized adjacency (bf16, zero padded)
    if precombined is None:
        mh_p, mh_b = combine_adjacency(adj_matrix, params["relation_weight"], Np, Bp)
    else:
        mh_p, mh_b = precombined

    x_p = jnp.zeros((Np, F), bf16).at[:N, :].set(x_feature.astype(bf16))
    tw_p = jnp.zeros((Bp, T), f32).at[:B, :].set(tweets.astype(f32))

    # split the classifier input weight [2H + T, H] into its three concat operands
    bc_w0 = params["bc_w0"].astype(f32)
    bc_wg, bc_wp, bc_wt = bc_w0[:H], bc_w0[H:2 * H], bc_w0[2 * H:]

    # lane-dense classifier head: pad the 2-wide output layer to 128 columns
    bc_w1p = jnp.zeros((H, 128), f32).at[:, :2].set(params["bc_w1"].astype(f32))
    bc_b1p = jnp.zeros((1, 128), f32).at[:, :2].set(params["bc_b1"].astype(f32))

    weights = (
        params["gc_w0"].astype(bf16), params["gc_b0"].astype(f32),
        params["gc_w1"].astype(bf16), params["gc_b1"].astype(f32),
        params["pe_w0"].astype(f32), params["pe_b0"].astype(f32),
        params["pe_w1"].astype(f32), params["pe_b1"].astype(f32),
        bc_wg, bc_wp, bc_wt, params["bc_b0"].astype(f32),
        bc_w1p, bc_b1p,
    )
    inputs = (x_p, mh_p, mh_b, tw_p) + weights

    def full_spec(a):
        nd = a.ndim
        return pl.BlockSpec(a.shape, lambda i, _nd=nd: (0,) * _nd)

    in_specs = [
        full_spec(x_p),
        pl.BlockSpec((TN, Np), lambda i: (i, 0)),    # streamed symmetrized adjacency rows
        full_spec(mh_b),
        full_spec(tw_p),
    ] + [full_spec(w) for w in weights]

    kernel = functools.partial(_similarity_kernel, tile_n=TN, batch_pad=Bp)

    grid_spec = pltpu.PrefetchScalarGridSpec(
        num_scalar_prefetch=0,
        grid=(KB,),
        in_specs=in_specs,
        out_specs=pl.BlockSpec((Bp, 128), lambda i: (0, 0)),
        scratch_shapes=[
            pltpu.VMEM((Np, H), f32),    # g0 rows (block writes, no accumulation)
            pltpu.VMEM((Np, H), bf16),   # s0 = x @ W0
        ],
    )

    flops = (2 * Np * Np * H                              # hop-1: mh @ s0
             + 2 * Bp * Np * H                            # hop-2 restricted to batch rows
             + 2 * Np * F * H + 2 * Np * H * H            # s0, s1
             + 2 * Bp * (F * H + 4 * H * H + T * H + 128 * H))
    weight_bytes = sum(int(w.size) * w.dtype.itemsize for w in weights)
    bytes_accessed = (2 * Np * Np + 2 * Bp * Np           # mh (bf16) + mh[:Bp, :]
                      + 2 * Np * F + 4 * Bp * T
                      + weight_bytes + 4 * Bp * 128)
    cost = pl.CostEstimate(flops=int(flops), transcendentals=int(Bp * 128),
                           bytes_accessed=int(bytes_accessed))

    out_padded = pl.pallas_call(
        kernel,
        out_shape=jax.ShapeDtypeStruct((Bp, 128), f32),
        grid_spec=grid_spec,
        compiler_params=pltpu.CompilerParams(
            # the single grid axis carries scratch state -> reduction-style axis
            dimension_semantics=("arbitrary",),
            vmem_limit_bytes=int(vmem_limit),
        ),
        cost_estimate=cost,
    )(*inputs)

    return out_padded[:B, :2]


# -----------------------------------------------------------------------------
# Pure-JAX reference + parameter init + test
# -----------------------------------------------------------------------------
def similarity_model_ref(x_feature, adj_matrix, des, tweets, batch_size, params):
    """Pure-JAX (f32) reference mirroring the PyTorch forward, for verification."""
    del des
    x = x_feature.astype(jnp.float32)
    mh = jnp.matmul(adj_matrix.astype(jnp.float32), params["relation_weight"])[..., 0]
    mh = mh + mh.T
    g0 = mh @ (x @ params["gc_w0"]) + params["gc_b0"]
    g1 = mh @ (g0 @ params["gc_w1"]) + params["gc_b1"]
    graph_emb = 0.5 * (g0 + g1)
    graph_emb = graph_emb[:batch_size]

    up = x[:batch_size]
    h = _leaky_relu(up @ params["pe_w0"] + params["pe_b0"])
    prop_emb = h @ params["pe_w1"] + params["pe_b1"]

    feat = jnp.concatenate([graph_emb, prop_emb, tweets.astype(jnp.float32)], axis=1)
    hid = _leaky_relu(feat @ params["bc_w0"] + params["bc_b0"])
    logits = _leaky_relu(hid @ params["bc_w1"] + params["bc_b1"])
    return jax.nn.softmax(logits, axis=-1)


def init_params(key, n_cat_prop, n_num_prop, text_feature_dim, hidden_dim, n_relation=2):
    """Deterministic parameter init (shapes follow the module's __init__)."""
    F = n_cat_prop + n_num_prop
    H = hidden_dim
    T = text_feature_dim
    ks = jax.random.split(key, 16)

    def u(k, shape, bound):
        return jax.random.uniform(k, shape, jnp.float32, -bound, bound)

    std_gc = 1.0 / (H ** 0.5)            # GraphConvolution.reset_parameters
    params = {
        "relation_weight": jax.random.uniform(ks[0], (n_relation, 1), jnp.float32, 0.0, 0.1),
        "gc_w0": u(ks[1], (F, H), std_gc), "gc_b0": u(ks[2], (1, H), std_gc),
        "gc_w1": u(ks[3], (H, H), std_gc), "gc_b1": u(ks[4], (1, H), std_gc),
        # Linear layers (stored [in, out]); bound = 1/sqrt(fan_in)
        "pe_w0": u(ks[5], (F, H), 1.0 / (F ** 0.5)), "pe_b0": u(ks[6], (1, H), 1.0 / (F ** 0.5)),
        "pe_w1": u(ks[7], (H, H), 1.0 / (H ** 0.5)), "pe_b1": u(ks[8], (1, H), 1.0 / (H ** 0.5)),
        "bc_w0": u(ks[9], (2 * H + T, H), 1.0 / ((2 * H + T) ** 0.5)),
        "bc_b0": u(ks[10], (1, H), 1.0 / ((2 * H + T) ** 0.5)),
        "bc_w1": u(ks[11], (H, 2), 1.0 / (H ** 0.5)),
        "bc_b1": u(ks[12], (1, 2), 1.0 / (H ** 0.5)),
    }
    return params


if __name__ == "__main__":
    # Small, module-consistent shapes.
    N = 16                 # total nodes in the graph
    n_cat_prop, n_num_prop = 3, 5
    F = n_cat_prop + n_num_prop
    hidden_dim = 32
    text_feature_dim = 16
    n_relation = 2
    batch_size = 8

    key = jax.random.PRNGKey(0)
    k_param, k_x, k_adj, k_tw, k_des = jax.random.split(key, 5)

    params = init_params(k_param, n_cat_prop, n_num_prop, text_feature_dim,
                         hidden_dim, n_relation)

    x_feature = jax.random.normal(k_x, (N, F), jnp.float32)
    adj_matrix = jax.random.uniform(k_adj, (N, N, n_relation), jnp.float32)  # [N, N, R]
    tweets = jax.random.normal(k_tw, (batch_size, text_feature_dim), jnp.float32)
    des = jax.random.normal(k_des, (batch_size, text_feature_dim), jnp.float32)  # unused

    out = similarity_model(x_feature, adj_matrix, des, tweets, batch_size, params)
    out = jax.block_until_ready(out)

    ref = similarity_model_ref(x_feature, adj_matrix, des, tweets, batch_size, params)
    assert out.shape == (batch_size, 2)
    # adjacency / features / GCN weights feed the MXU in bfloat16 (f32 acc) -> relaxed tol
    assert jnp.allclose(out, ref, atol=2e-2, rtol=2e-2), (out, ref)
    print("KERNEL_OK")
</pallas_src>

<mosaic_0001>
module attributes {stable_mosaic.version = 11 : i64} {
  func.func @_similarity_kernel(%arg0: i32, %arg1: memref<128x8xbf16, #tpu.memory_space<vmem>>, %arg2: memref<128x128xbf16, #tpu.memory_space<vmem>>, %arg3: memref<16x128xbf16, #tpu.memory_space<vmem>>, %arg4: memref<16x16xf32, #tpu.memory_space<vmem>>, %arg5: memref<8x32xbf16, #tpu.memory_space<vmem>>, %arg6: memref<1x32xf32, #tpu.memory_space<vmem>>, %arg7: memref<32x32xbf16, #tpu.memory_space<vmem>>, %arg8: memref<1x32xf32, #tpu.memory_space<vmem>>, %arg9: memref<8x32xf32, #tpu.memory_space<vmem>>, %arg10: memref<1x32xf32, #tpu.memory_space<vmem>>, %arg11: memref<32x32xf32, #tpu.memory_space<vmem>>, %arg12: memref<1x32xf32, #tpu.memory_space<vmem>>, %arg13: memref<32x32xf32, #tpu.memory_space<vmem>>, %arg14: memref<32x32xf32, #tpu.memory_space<vmem>>, %arg15: memref<16x32xf32, #tpu.memory_space<vmem>>, %arg16: memref<1x32xf32, #tpu.memory_space<vmem>>, %arg17: memref<32x128xf32, #tpu.memory_space<vmem>>, %arg18: memref<1x128xf32, #tpu.memory_space<vmem>>, %arg19: memref<16x128xf32, #tpu.memory_space<vmem>>, %arg20: memref<128x32xf32, #tpu.memory_space<vmem>>, %arg21: memref<128x32xbf16, #tpu.memory_space<vmem>>) attributes {dimension_semantics = [#tpu.dimension_semantics<arbitrary>], iteration_bounds = array<i64: 1>, scalar_prefetch = 0 : i64, scratch_operands = 2 : i64, tpu.core_type = #tpu.core_type<tc>, window_params = [{pipeline_mode = #tpu.pipeline_mode<synchronous>, transform_indices = @transform_0, window_bounds = array<i64: 128, 8>}, {transform_indices = @transform_1, window_bounds = array<i64: 128, 128>}, {pipeline_mode = #tpu.pipeline_mode<synchronous>, transform_indices = @transform_2, window_bounds = array<i64: 16, 128>}, {pipeline_mode = #tpu.pipeline_mode<synchronous>, transform_indices = @transform_3, window_bounds = array<i64: 16, 16>}, {pipeline_mode = #tpu.pipeline_mode<synchronous>, transform_indices = @transform_4, window_bounds = array<i64: 8, 32>}, {pipeline_mode = #tpu.pipeline_mode<synchronous>, transform_indices = @transform_5, window_bounds = array<i64: 1, 32>}, {pipeline_mode = #tpu.pipeline_mode<synchronous>, transform_indices = @transform_6, window_bounds = array<i64: 32, 32>}, {pipeline_mode = #tpu.pipeline_mode<synchronous>, transform_indices = @transform_7, window_bounds = array<i64: 1, 32>}, {pipeline_mode = #tpu.pipeline_mode<synchronous>, transform_indices = @transform_8, window_bounds = array<i64: 8, 32>}, {pipeline_mode = #tpu.pipeline_mode<synchronous>, transform_indices = @transform_9, window_bounds = array<i64: 1, 32>}, {pipeline_mode = #tpu.pipeline_mode<synchronous>, transform_indices = @transform_10, window_bounds = array<i64: 32, 32>}, {pipeline_mode = #tpu.pipeline_mode<synchronous>, transform_indices = @transform_11, window_bounds = array<i64: 1, 32>}, {pipeline_mode = #tpu.pipeline_mode<synchronous>, transform_indices = @transform_12, window_bounds = array<i64: 32, 32>}, {pipeline_mode = #tpu.pipeline_mode<synchronous>, transform_indices = @transform_13, window_bounds = array<i64: 32, 32>}, {pipeline_mode = #tpu.pipeline_mode<synchronous>, transform_indices = @transform_14, window_bounds = array<i64: 16, 32>}, {pipeline_mode = #tpu.pipeline_mode<synchronous>, transform_indices = @transform_15, window_bounds = array<i64: 1, 32>}, {pipeline_mode = #tpu.pipeline_mode<synchronous>, transform_indices = @transform_16, window_bounds = array<i64: 32, 128>}, {pipeline_mode = #tpu.pipeline_mode<synchronous>, transform_indices = @transform_17, window_bounds = array<i64: 1, 128>}, {pipeline_mode = #tpu.pipeline_mode<synchronous>, transform_indices = @transform_18, window_bounds = array<i64: 16, 128>}]} {
    %c0_i32 = arith.constant 0 : i32
    %0 = arith.cmpi eq, %arg0, %c0_i32 : i32
    %1 = arith.extui %0 : i1 to i32
    %c0_i32_0 = arith.constant 0 : i32
    %2 = arith.cmpi ne, %1, %c0_i32_0 : i32
    scf.if %2 {
      %c0_9 = arith.constant 0 : index
      %c0_10 = arith.constant 0 : index
      %16 = vector.load %arg1[%c0_9, %c0_10] : memref<128x8xbf16, #tpu.memory_space<vmem>>, vector<128x8xbf16>
      %c0_11 = arith.constant 0 : index
      %c0_12 = arith.constant 0 : index
      %17 = vector.load %arg5[%c0_11, %c0_12] : memref<8x32xbf16, #tpu.memory_space<vmem>>, vector<8x32xbf16>
      %cst_13 = arith.constant dense<0.000000e+00> : vector<128x32xf32>
      %18 = tpu.matmul %16, %17, %cst_13 {dimension_numbers = #tpu.dot_dimension_numbers<[1], [0], [0], [1], [0, 0, 1, 1], [], []>} : vector<128x8xbf16>, vector<8x32xbf16>, vector<128x32xf32> -> vector<128x32xf32>
      %19 = arith.truncf %18 : vector<128x32xf32> to vector<128x32xbf16>
      %c0_14 = arith.constant 0 : index
      %c0_15 = arith.constant 0 : index
      %20 = vector.load %arg21[%c0_14, %c0_15] : memref<128x32xbf16, #tpu.memory_space<vmem>>, vector<128x32xbf16>
      tpu.vector_store %arg21[%c0_14, %c0_15], %19 {strides = array<i32>} : memref<128x32xbf16, #tpu.memory_space<vmem>>, vector<128x32xbf16>,
    } else {
    }
    %c128_i32 = arith.constant 128 : i32
    %3 = arith.muli %arg0, %c128_i32 : i32
    %4 = tpu.assume_multiple %3, 128 : i32
    %c0 = arith.constant 0 : index
    %c0_1 = arith.constant 0 : index
    %5 = vector.load %arg2[%c0, %c0_1] : memref<128x128xbf16, #tpu.memory_space<vmem>>, vector<128x128xbf16>
    %c0_2 = arith.constant 0 : index
    %c0_3 = arith.constant 0 : index
    %6 = vector.load %arg21[%c0_2, %c0_3] : memref<128x32xbf16, #tpu.memory_space<vmem>>, vector<128x32xbf16>
    %cst = arith.constant dense<0.000000e+00> : vector<128x32xf32>
    %7 = tpu.matmul %5, %6, %cst {dimension_numbers = #tpu.dot_dimension_numbers<[1], [0], [0], [1], [0, 0, 1, 1], [], []>} : vector<128x128xbf16>, vector<128x32xbf16>, vector<128x32xf32> -> vector<128x32xf32>
    %c0_4 = arith.constant 0 : index
    %c0_5 = arith.constant 0 : index
    %8 = vector.load %arg6[%c0_4, %c0_5] : memref<1x32xf32, #tpu.memory_space<vmem>>, vector<1x32xf32>
    %9 = vector.broadcast %8 : vector<1x32xf32> to vector<128x32xf32>
    %10 = arith.addf %7, %9 : vector<128x32xf32>
    %11 = arith.index_cast %4 : i32 to index
    %c0_6 = arith.constant 0 : index
    %12 = vector.load %arg20[%11, %c0_6] : memref<128x32xf32, #tpu.memory_space<vmem>>, vector<128x32xf32>
    tpu.vector_store %arg20[%11, %c0_6], %10 {strides = array<i32>} : memref<128x32xf32, #tpu.memory_space<vmem>>, vector<128x32xf32>,
    %c0_i32_7 = arith.constant 0 : i32
    %13 = arith.cmpi eq, %arg0, %c0_i32_7 : i32
    %14 = arith.extui %13 : i1 to i32
    %c0_i32_8 = arith.constant 0 : i32
    %15 = arith.cmpi ne, %14, %c0_i32_8 : i32
    scf.if %15 {
      %c0_9 = arith.constant 0 : index
      %c0_10 = arith.constant 0 : index
      %16 = vector.load %arg20[%c0_9, %c0_10] : memref<128x32xf32, #tpu.memory_space<vmem>>, vector<128x32xf32>
      %17 = arith.truncf %16 : vector<128x32xf32> to vector<128x32xbf16>
      %c0_11 = arith.constant 0 : index
      %c0_12 = arith.constant 0 : index
      %18 = vector.load %arg7[%c0_11, %c0_12] : memref<32x32xbf16, #tpu.memory_space<vmem>>, vector<32x32xbf16>
      %cst_13 = arith.constant dense<0.000000e+00> : vector<128x32xf32>
      %19 = tpu.matmul %17, %18, %cst_13 {dimension_numbers = #tpu.dot_dimension_numbers<[1], [0], [0], [1], [0, 0, 1, 1], [], []>} : vector<128x32xbf16>, vector<32x32xbf16>, vector<128x32xf32> -> vector<128x32xf32>
      %c0_14 = arith.constant 0 : index
      %c0_15 = arith.constant 0 : index
      %20 = vector.load %arg3[%c0_14, %c0_15] : memref<16x128xbf16, #tpu.memory_space<vmem>>, vector<16x128xbf16>
      %21 = arith.truncf %19 : vector<128x32xf32> to vector<128x32xbf16>
      %cst_16 = arith.constant dense<0.000000e+00> : vector<16x32xf32>
      %22 = tpu.matmul %20, %21, %cst_16 {dimension_numbers = #tpu.dot_dimension_numbers<[1], [0], [0], [1], [0, 0, 1, 1], [], []>} : vector<16x128xbf16>, vector<128x32xbf16>, vector<16x32xf32> -> vector<16x32xf32>
      %c0_17 = arith.constant 0 : index
      %c0_18 = arith.constant 0 : index
      %23 = vector.load %arg8[%c0_17, %c0_18] : memref<1x32xf32, #tpu.memory_space<vmem>>, vector<1x32xf32>
      %24 = vector.broadcast %23 : vector<1x32xf32> to vector<16x32xf32>
      %25 = arith.addf %22, %24 : vector<16x32xf32>
      %c0_19 = arith.constant 0 : index
      %c0_20 = arith.constant 0 : index
      %26 = vector.load %arg20[%c0_19, %c0_20] : memref<128x32xf32, #tpu.memory_space<vmem>>, vector<16x32xf32>
      %27 = arith.addf %26, %25 : vector<16x32xf32>
      %cst_21 = arith.constant 5.000000e-01 : f32
      %28 = vector.broadcast %cst_21 : f32 to vector<16x32xf32>
      %29 = arith.mulf %28, %27 : vector<16x32xf32>
      %c0_22 = arith.constant 0 : index
      %c0_23 = arith.constant 0 : index
      %30 = vector.load %arg1[%c0_22, %c0_23] : memref<128x8xbf16, #tpu.memory_space<vmem>>, vector<16x8xbf16>
      %31 = arith.extf %30 : vector<16x8xbf16> to vector<16x8xf32>
      %c0_24 = arith.constant 0 : index
      %c0_25 = arith.constant 0 : index
      %32 = vector.load %arg9[%c0_24, %c0_25] : memref<8x32xf32, #tpu.memory_space<vmem>>, vector<8x32xf32>
      %cst_26 = arith.constant dense<0.000000e+00> : vector<16x32xf32>
      %33 = tpu.matmul %31, %32, %cst_26 {dimension_numbers = #tpu.dot_dimension_numbers<[1], [0], [0], [1], [0, 0, 1, 1], [], []>} : vector<16x8xf32>, vector<8x32xf32>, vector<16x32xf32> -> vector<16x32xf32>
      %c0_27 = arith.constant 0 : index
      %c0_28 = arith.constant 0 : index
      %34 = vector.load %arg10[%c0_27, %c0_28] : memref<1x32xf32, #tpu.memory_space<vmem>>, vector<1x32xf32>
      %35 = vector.broadcast %34 : vector<1x32xf32> to vector<16x32xf32>
      %36 = arith.addf %33, %35 : vector<16x32xf32>
      %cst_29 = arith.constant 0.000000e+00 : f32
      %37 = vector.broadcast %cst_29 : f32 to vector<16x32xf32>
      %38 = arith.cmpf ogt, %36, %37 : vector<16x32xf32>
      %cst_30 = arith.constant 0.00999999977 : f32
      %39 = vector.broadcast %cst_30 : f32 to vector<16x32xf32>
      %40 = arith.mulf %39, %36 : vector<16x32xf32>
      %41 = arith.select %38, %36, %40 : vector<16x32xi1>, vector<16x32xf32>
      %c0_31 = arith.constant 0 : index
      %c0_32 = arith.constant 0 : index
      %42 = vector.load %arg11[%c0_31, %c0_32] : memref<32x32xf32, #tpu.memory_space<vmem>>, vector<32x32xf32>
      %cst_33 = arith.constant dense<0.000000e+00> : vector<16x32xf32>
      %43 = tpu.matmul %41, %42, %cst_33 {dimension_numbers = #tpu.dot_dimension_numbers<[1], [0], [0], [1], [0, 0, 1, 1], [], []>} : vector<16x32xf32>, vector<32x32xf32>, vector<16x32xf32> -> vector<16x32xf32>
      %c0_34 = arith.constant 0 : index
      %c0_35 = arith.constant 0 : index
      %44 = vector.load %arg12[%c0_34, %c0_35] : memref<1x32xf32, #tpu.memory_space<vmem>>, vector<1x32xf32>
      %45 = vector.broadcast %44 : vector<1x32xf32> to vector<16x32xf32>
      %46 = arith.addf %43, %45 : vector<16x32xf32>
      %c0_36 = arith.constant 0 : index
      %c0_37 = arith.constant 0 : index
      %47 = vector.load %arg13[%c0_36, %c0_37] : memref<32x32xf32, #tpu.memory_space<vmem>>, vector<32x32xf32>
      %cst_38 = arith.constant dense<0.000000e+00> : vector<16x32xf32>
      %48 = tpu.matmul %29, %47, %cst_38 {dimension_numbers = #tpu.dot_dimension_numbers<[1], [0], [0], [1], [0, 0, 1, 1], [], []>} : vector<16x32xf32>, vector<32x32xf32>, vector<16x32xf32> -> vector<16x32xf32>
      %c0_39 = arith.constant 0 : index
      %c0_40 = arith.constant 0 : index
      %49 = vector.load %arg14[%c0_39, %c0_40] : memref<32x32xf32, #tpu.memory_space<vmem>>, vector<32x32xf32>
      %cst_41 = arith.constant dense<0.000000e+00> : vector<16x32xf32>
      %50 = tpu.matmul %46, %49, %cst_41 {dimension_numbers = #tpu.dot_dimension_numbers<[1], [0], [0], [1], [0, 0, 1, 1], [], []>} : vector<16x32xf32>, vector<32x32xf32>, vector<16x32xf32> -> vector<16x32xf32>
      %51 = arith.addf %48, %50 : vector<16x32xf32>
      %c0_42 = arith.constant 0 : index
      %c0_43 = arith.constant 0 : index
      %52 = vector.load %arg4[%c0_42, %c0_43] : memref<16x16xf32, #tpu.memory_space<vmem>>, vector<16x16xf32>
      %c0_44 = arith.constant 0 : index
      %c0_45 = arith.constant 0 : index
      %53 = vector.load %arg15[%c0_44, %c0_45] : memref<16x32xf32, #tpu.memory_space<vmem>>, vector<16x32xf32>
      %cst_46 = arith.constant dense<0.000000e+00> : vector<16x32xf32>
      %54 = tpu.matmul %52, %53, %cst_46 {dimension_numbers = #tpu.dot_dimension_numbers<[1], [0], [0], [1], [0, 0, 1, 1], [], []>} : vector<16x16xf32>, vector<16x32xf32>, vector<16x32xf32> -> vector<16x32xf32>
      %55 = arith.addf %51, %54 : vector<16x32xf32>
      %c0_47 = arith.constant 0 : index
      %c0_48 = arith.constant 0 : index
      %56 = vector.load %arg16[%c0_47, %c0_48] : memref<1x32xf32, #tpu.memory_space<vmem>>, vector<1x32xf32>
      %57 = vector.broadcast %56 : vector<1x32xf32> to vector<16x32xf32>
      %58 = arith.addf %55, %57 : vector<16x32xf32>
      %cst_49 = arith.constant 0.000000e+00 : f32
      %59 = vector.broadcast %cst_49 : f32 to vector<16x32xf32>
      %60 = arith.cmpf ogt, %58, %59 : vector<16x32xf32>
      %cst_50 = arith.constant 0.00999999977 : f32
      %61 = vector.broadcast %cst_50 : f32 to vector<16x32xf32>
      %62 = arith.mulf %61, %58 : vector<16x32xf32>
      %63 = arith.select %60, %58, %62 : vector<16x32xi1>, vector<16x32xf32>
      %c0_51 = arith.constant 0 : index
      %c0_52 = arith.constant 0 : index
      %64 = vector.load %arg17[%c0_51, %c0_52] : memref<32x128xf32, #tpu.memory_space<vmem>>, vector<32x128xf32>
      %cst_53 = arith.constant dense<0.000000e+00> : vector<16x128xf32>
      %65 = tpu.matmul %63, %64, %cst_53 {dimension_numbers = #tpu.dot_dimension_numbers<[1], [0], [0], [1], [0, 0, 1, 1], [], []>} : vector<16x32xf32>, vector<32x128xf32>, vector<16x128xf32> -> vector<16x128xf32>
      %c0_54 = arith.constant 0 : index
      %c0_55 = arith.constant 0 : index
      %66 = vector.load %arg18[%c0_54, %c0_55] : memref<1x128xf32, #tpu.memory_space<vmem>>, vector<1x128xf32>
      %67 = vector.broadcast %66 : vector<1x128xf32> to vector<16x128xf32>
      %68 = arith.addf %65, %67 : vector<16x128xf32>
      %cst_56 = arith.constant 0.000000e+00 : f32
      %69 = vector.broadcast %cst_56 : f32 to vector<16x128xf32>
      %70 = arith.cmpf ogt, %68, %69 : vector<16x128xf32>
      %cst_57 = arith.constant 0.00999999977 : f32
      %71 = vector.broadcast %cst_57 : f32 to vector<16x128xf32>
      %72 = arith.mulf %71, %68 : vector<16x128xf32>
      %73 = arith.select %70, %68, %72 : vector<16x128xi1>, vector<16x128xf32>
      %74 = tpu.iota {dimensions = array<i32: 1>} : vector<16x128xi32>
      %c2_i32 = arith.constant 2 : i32
      %75 = vector.broadcast %c2_i32 : i32 to vector<16x128xi32>
      %76 = arith.cmpi slt, %74, %75 : vector<16x128xi32>
      %cst_58 = arith.constant 0xFF800000 : f32
      %77 = vector.broadcast %cst_58 : f32 to vector<16x128xf32>
      %78 = arith.select %76, %73, %77 : vector<16x128xi1>, vector<16x128xf32>
      %cst_59 = arith.constant dense<0xFF800000> : vector<16xf32>
      %79 = vector.multi_reduction <maximumf>, %78, %cst_59 [1] : vector<16x128xf32> to vector<16xf32>
      %80 = vector.shape_cast %79 : vector<16xf32> to vector<16x1xf32>
      %81 = vector.broadcast %80 : vector<16x1xf32> to vector<16x128xf32>
      %82 = arith.subf %78, %81 : vector<16x128xf32>
      %83 = math.exp %82 : vector<16x128xf32>
      %cst_60 = arith.constant dense<0.000000e+00> : vector<16xf32>
      %84 = vector.multi_reduction <add>, %83, %cst_60 [1] : vector<16x128xf32> to vector<16xf32>
      %85 = vector.shape_cast %84 : vector<16xf32> to vector<16x1xf32>
      %86 = vector.broadcast %85 : vector<16x1xf32> to vector<16x128xf32>
      %87 = arith.divf %83, %86 : vector<16x128xf32>
      %c0_61 = arith.constant 0 : index
      %c0_62 = arith.constant 0 : index
      %88 = vector.load %arg19[%c0_61, %c0_62] : memref<16x128xf32, #tpu.memory_space<vmem>>, vector<16x128xf32>
      tpu.vector_store %arg19[%c0_61, %c0_62], %87 {strides = array<i32>} : memref<16x128xf32, #tpu.memory_space<vmem>>, vector<16x128xf32>,
    } else {
    }
    return
  }
  func.func @transform_0(%arg0: i32) -> (i32, i32) {
    %c0_i32 = arith.constant 0 : i32
    %c0_i32_0 = arith.constant 0 : i32
    %c0_i32_1 = arith.constant 0 : i32
    return %c0_i32, %c0_i32_0 : i32, i32
  }
  func.func @transform_1(%arg0: i32) -> (i32, i32) {
    %c0_i32 = arith.constant 0 : i32
    %c0_i32_0 = arith.constant 0 : i32
    return %arg0, %c0_i32 : i32, i32
  }
  func.func @transform_2(%arg0: i32) -> (i32, i32) {
    %c0_i32 = arith.constant 0 : i32
    %c0_i32_0 = arith.constant 0 : i32
    %c0_i32_1 = arith.constant 0 : i32
    return %c0_i32, %c0_i32_0 : i32, i32
  }
  func.func @transform_3(%arg0: i32) -> (i32, i32) {
    %c0_i32 = arith.constant 0 : i32
    %c0_i32_0 = arith.constant 0 : i32
    %c0_i32_1 = arith.constant 0 : i32
    return %c0_i32, %c0_i32_0 : i32, i32
  }
  func.func @transform_4(%arg0: i32) -> (i32, i32) {
    %c0_i32 = arith.constant 0 : i32
    %c0_i32_0 = arith.constant 0 : i32
    %c0_i32_1 = arith.constant 0 : i32
    return %c0_i32, %c0_i32_0 : i32, i32
  }
  func.func @transform_5(%arg0: i32) -> (i32, i32) {
    %c0_i32 = arith.constant 0 : i32
    %c0_i32_0 = arith.constant 0 : i32
    %c0_i32_1 = arith.constant 0 : i32
    return %c0_i32, %c0_i32_0 : i32, i32
  }
  func.func @transform_6(%arg0: i32) -> (i32, i32) {
    %c0_i32 = arith.constant 0 : i32
    %c0_i32_0 = arith.constant 0 : i32
    %c0_i32_1 = arith.constant 0 : i32
    return %c0_i32, %c0_i32_0 : i32, i32
  }
  func.func @transform_7(%arg0: i32) -> (i32, i32) {
    %c0_i32 = arith.constant 0 : i32
    %c0_i32_0 = arith.constant 0 : i32
    %c0_i32_1 = arith.constant 0 : i32
    return %c0_i32, %c0_i32_0 : i32, i32
  }
  func.func @transform_8(%arg0: i32) -> (i32, i32) {
    %c0_i32 = arith.constant 0 : i32
    %c0_i32_0 = arith.constant 0 : i32
    %c0_i32_1 = arith.constant 0 : i32
    return %c0_i32, %c0_i32_0 : i32, i32
  }
  func.func @transform_9(%arg0: i32) -> (i32, i32) {
    %c0_i32 = arith.constant 0 : i32
    %c0_i32_0 = arith.constant 0 : i32
    %c0_i32_1 = arith.constant 0 : i32
    return %c0_i32, %c0_i32_0 : i32, i32
  }
  func.func @transform_10(%arg0: i32) -> (i32, i32) {
    %c0_i32 = arith.constant 0 : i32
    %c0_i32_0 = arith.constant 0 : i32
    %c0_i32_1 = arith.constant 0 : i32
    return %c0_i32, %c0_i32_0 : i32, i32
  }
  func.func @transform_11(%arg0: i32) -> (i32, i32) {
    %c0_i32 = arith.constant 0 : i32
    %c0_i32_0 = arith.constant 0 : i32
    %c0_i32_1 = arith.constant 0 : i32
    return %c0_i32, %c0_i32_0 : i32, i32
  }
  func.func @transform_12(%arg0: i32) -> (i32, i32) {
    %c0_i32 = arith.constant 0 : i32
    %c0_i32_0 = arith.constant 0 : i32
    %c0_i32_1 = arith.constant 0 : i32
    return %c0_i32, %c0_i32_0 : i32, i32
  }
  func.func @transform_13(%arg0: i32) -> (i32, i32) {
    %c0_i32 = arith.constant 0 : i32
    %c0_i32_0 = arith.constant 0 : i32
    %c0_i32_1 = arith.constant 0 : i32
    return %c0_i32, %c0_i32_0 : i32, i32
  }
  func.func @transform_14(%arg0: i32) -> (i32, i32) {
    %c0_i32 = arith.constant 0 : i32
    %c0_i32_0 = arith.constant 0 : i32
    %c0_i32_1 = arith.constant 0 : i32
    return %c0_i32, %c0_i32_0 : i32, i32
  }
  func.func @transform_15(%arg0: i32) -> (i32, i32) {
    %c0_i32 = arith.constant 0 : i32
    %c0_i32_0 = arith.constant 0 : i32
    %c0_i32_1 = arith.constant 0 : i32
    return %c0_i32, %c0_i32_0 : i32, i32
  }
  func.func @transform_16(%arg0: i32) -> (i32, i32) {
    %c0_i32 = arith.constant 0 : i32
    %c0_i32_0 = arith.constant 0 : i32
    %c0_i32_1 = arith.constant 0 : i32
    return %c0_i32, %c0_i32_0 : i32, i32
  }
  func.func @transform_17(%arg0: i32) -> (i32, i32) {
    %c0_i32 = arith.constant 0 : i32
    %c0_i32_0 = arith.constant 0 : i32
    %c0_i32_1 = arith.constant 0 : i32
    return %c0_i32, %c0_i32_0 : i32, i32
  }
  func.func @transform_18(%arg0: i32) -> (i32, i32) {
    %c0_i32 = arith.constant 0 : i32
    %c0_i32_0 = arith.constant 0 : i32
    %c0_i32_1 = arith.constant 0 : i32
    return %c0_i32, %c0_i32_0 : i32, i32
  }
}

</mosaic_0001>

<bundles_post_ra>
// kernel: tpu_custom_call.1
= control target key start
LH: loop header
LB: loop body
LE: loop exit
PB: predicated region body
PF: predicated region fallthrough
CT: control target
= control target key end

     0   :  { %s1973_s0 = inlined_call_operand.vmem [shape: bf16[128,8], index: 0, kind: input, shape index: {}]   ;;  %s1974_s1 = inlined_call_operand.vmem [shape: bf16[128,128], index: 1, kind: input, shape index: {}]   ;;  %s1975_s2 = inlined_call_operand.hbm [shape: bf16[16,128], index: 2, kind: input, shape index: {}]   ;;  %s1976_s3 = inlined_call_operand.hbm [shape: f32[16,16], index: 3, kind: input, shape index: {}]   ;;  %s1977_s4 = inlined_call_operand.hbm [shape: bf16[8,32], index: 4, kind: input, shape index: {}]   ;;  %s1978_s5 = inlined_call_operand.hbm [shape: f32[1,32], index: 5, kind: input, shape index: {}]   ;;  %s1979_s6 = inlined_call_operand.hbm [shape: bf16[32,32], index: 6, kind: input, shape index: {}]   ;;  %s1980_s7 = inlined_call_operand.hbm [shape: f32[1,32], index: 7, kind: input, shape index: {}]   ;;  %s1981_s8 = inlined_call_operand.hbm [shape: f32[8,32], index: 8, kind: input, shape index: {}]   ;;  %s1982_s9 = inlined_call_operand.hbm [shape: f32[1,32], index: 9, kind: input, shape index: {}]   ;;  %s1983_s10 = inlined_call_operand.hbm [shape: f32[32,32], index: 10, kind: input, shape index: {}]   ;;  %s1984_s11 = inlined_call_operand.hbm [shape: f32[1,32], index: 11, kind: input, shape index: {}]   ;;  %s1985_s12 = inlined_call_operand.hbm [shape: f32[32,32], index: 12, kind: input, shape index: {}]   ;;  %s1986_s13 = inlined_call_operand.hbm [shape: f32[32,32], index: 13, kind: input, shape index: {}]   ;;  %s1987_s14 = inlined_call_operand.vmem [shape: f32[16,32], index: 14, kind: input, shape index: {}]   ;;  %s1988_s15 = inlined_call_operand.vmem [shape: f32[1,32], index: 15, kind: input, shape index: {}]   ;;  %s1989_s16 = inlined_call_operand.hbm [shape: f32[32,128], index: 16, kind: input, shape index: {}]   ;;  %s1990_s17 = inlined_call_operand.vmem [shape: f32[1,128], index: 17, kind: input, shape index: {}]   ;;  %s1991_s18 = inlined_call_operand.hbm [shape: f32[16,128], index: 18, kind: output, shape index: {}]  }
   0x1   :  { %1994 = sst [smem:[#allocation34_spill]] %s1973_s0 }
   0x2   :  { %1995 = sst [smem:[#allocation35_spill]] %s1974_s1 }
   0x3   :  { %1996 = sst [smem:[#allocation36_spill]] %s1975_s2 }
   0x4   :  { %23 = vsyncpa [#allocation5], 0 }
   0x5   :  { %24 = vsyncpa [#allocation8], 0 }
   0x6   :  { %25 = vsyncpa [#allocation11], 0 }
   0x7   :  { %26 = vsyncpa [#allocation14], 0 }
   0x8   :  { %27 = vsyncpa [#allocation17], 0 }
   0x9   :  { %28 = vsyncpa [#allocation20], 0 }
   0xa   :  { %29 = vsyncpa [#allocation23], 0  ;;  %s52_s29 = sshll.u32 %s1976_s3, 4  ;;  %s53_s29 = int_to_ptr.hbm [resolvable:$true] %s52_s29 }
   0xb   :  { %30 = vsyncpa [#allocation6], 0  ;;  %s1653_s30 = smov [#allocation7]   ;;  %s77_s20 = sshll.u32 %s1978_s5, 4  ;;  %s78_s20 = int_to_ptr.hbm [resolvable:$true] %s77_s20 }
   0xc   :  { %s54_s0 = sshll.u32 %s1653_s30, 4  ;;  %s1654_s21 = smov 128   ;;  %s55_s0 = int_to_ptr.vmem [resolvable:$true] %s54_s0 }
   0xd   :  { %s1655_s22 = smov 8   ;;  %s1656_s2 = smov [#allocation10]  }
   0xe   :  { %60 = dma.hbm_to_vmem [thread:$0]  %s53_s29, 256, %s55_s0, [#allocation8], %s1654_s21, %s1654_s21, %s1655_s22  }
   0xf   :  { %s79_s23 = sshll.u32 %s1656_s2, 4  ;;  %s101_s25 = sshll.u32 %s1980_s7, 4  ;;  %s80_s23 = int_to_ptr.vmem [resolvable:$true] %s79_s23  ;;  %s102_s25 = int_to_ptr.hbm [resolvable:$true] %s101_s25 }
  0x10   :  { %82 = dma.hbm_to_vmem [thread:$0]  %s78_s20, 16, %s80_s23, [#allocation11]  }
  0x11   :  { %s123_s5 = sshll.u32 %s1982_s9, 4  ;;  %s1657_s28 = smov [#allocation13]   ;;  %s124_s5 = int_to_ptr.hbm [resolvable:$true] %s123_s5 }
  0x12   :  { %s103_s30 = sshll.u32 %s1657_s28, 4  ;;  %s1658_s29 = smov [#allocation16]   ;;  %s104_s30 = int_to_ptr.vmem [resolvable:$true] %s103_s30 }
  0x13   :  { %106 = dma.hbm_to_vmem [thread:$0]  %s102_s25, 16, %s104_s30, [#allocation14]  }
  0x14   :  { %s125_s0 = sshll.u32 %s1658_s29, 4  ;;  %s147_s2 = sshll.u32 %s1984_s11, 4  ;;  %s126_s0 = int_to_ptr.vmem [resolvable:$true] %s125_s0  ;;  %s148_s2 = int_to_ptr.hbm [resolvable:$true] %s147_s2 }
  0x15   :  { %128 = dma.hbm_to_vmem [thread:$0]  %s124_s5, 16, %s126_s0, [#allocation17]  }
  0x16   :  { %s170_s23 = sshll.u32 %s1986_s13, 4  ;;  %s1659_s24 = smov [#allocation19]   ;;  %s171_s23 = int_to_ptr.hbm [resolvable:$true] %s170_s23 }
  0x17   :  { %s149_s9 = sshll.u32 %s1659_s24, 4  ;;  %s1660_s3 = smov [#allocation22]   ;;  %s150_s9 = int_to_ptr.vmem [resolvable:$true] %s149_s9 }
  0x18   :  { %152 = dma.hbm_to_vmem [thread:$0]  %s148_s2, 16, %s150_s9, [#allocation20]  }
  0x19   :  { %s172_s25 = sshll.u32 %s1660_s3, 4  ;;  %s1997_s28 = sld [smem:[#allocation36_spill]]  ;;  %s173_s25 = int_to_ptr.vmem [resolvable:$true] %s172_s25 }
  0x1a   :  { %178 = dma.hbm_to_vmem [thread:$0]  %s171_s23, 512, %s173_s25, [#allocation23], %s1654_s21, %s1654_s21, %s1655_s22  }
  0x1b   :  { %s1661_s11 = smov [#allocation4]   ;;  %s66_s0 = sshll.u32 %s1977_s4, 4  ;;  %s67_s0 = int_to_ptr.hbm [resolvable:$true] %s66_s0 }
  0x1c   :  { %s41_s5 = sshll.u32 %s1661_s11, 4  ;;  %s1662_s19 = smov 64   ;;  %s42_s5 = int_to_ptr.vmem [resolvable:$true] %s41_s5 }
  0x1d   :  { %s1663_s1 = smov 4   ;;  %s1664_s2 = smov [#allocation9]  }
  0x1e   :  { %s68_s7 = sshll.u32 %s1664_s2, 4  ;;  %s87_s9 = sshll.u32 %s1979_s6, 4  ;;  %s69_s7 = int_to_ptr.vmem [resolvable:$true] %s68_s7  ;;  %s88_s9 = int_to_ptr.hbm [resolvable:$true] %s87_s9 }
  0x1f   :  { %s39_s30 = sshll.u32 %s1997_s28, 4  ;;  %s112_s25 = sshll.u32 %s1981_s8, 4  ;;  %s40_s30 = int_to_ptr.hbm [resolvable:$true] %s39_s30  ;;  %s113_s25 = int_to_ptr.hbm [resolvable:$true] %s112_s25 }
  0x20   :  { %47 = dma.hbm_to_vmem [thread:$0]  %s40_s30, 128, %s42_s5, [#allocation5], %s1662_s19, %s1662_s19, %s1663_s1  }
  0x21   :  { %71 = dma.hbm_to_vmem [thread:$0]  %s67_s0, 64, %s69_s7, [#allocation8]  }
  0x22   :  { %s1665_s26 = smov [#allocation12]   ;;  %s1666_s4 = smov [#allocation15]  }
  0x23   :  { %s89_s27 = sshll.u32 %s1665_s26, 4  ;;  %s114_s28 = sshll.u32 %s1666_s4, 4  ;;  %s90_s27 = int_to_ptr.vmem [resolvable:$true] %s89_s27  ;;  %s115_s28 = int_to_ptr.vmem [resolvable:$true] %s114_s28 }
  0x24   :  { %95 = dma.hbm_to_vmem [thread:$0]  %s88_s9, 256, %s90_s27, [#allocation11], %s1662_s19, %s1662_s19, %s1663_s1  }
  0x25   :  { %s133_s5 = sshll.u32 %s1983_s10, 4  ;;  %s157_s29 = sshll.u32 %s1985_s12, 4  ;;  %s134_s5 = int_to_ptr.hbm [resolvable:$true] %s133_s5  ;;  %s158_s29 = int_to_ptr.hbm [resolvable:$true] %s157_s29 }
  0x26   :  { %117 = dma.hbm_to_vmem [thread:$0]  %s113_s25, 128, %s115_s28, [#allocation14]  }
  0x27   :  { %s1667_s0 = smov [#allocation18]   ;;  %s1668_s19 = smov [#allocation21]  }
  0x28   :  { %s135_s8 = sshll.u32 %s1667_s0, 4  ;;  %s159_s1 = sshll.u32 %s1668_s19, 4  ;;  %s136_s8 = int_to_ptr.vmem [resolvable:$true] %s135_s8  ;;  %s160_s1 = int_to_ptr.vmem [resolvable:$true] %s159_s1 }
  0x29   :  { %141 = dma.hbm_to_vmem [thread:$0]  %s134_s5, 512, %s136_s8, [#allocation17], %s1654_s21, %s1654_s21, %s1655_s22  }
  0x2a   :  { %s187_s10 = sshll.u32 %s1989_s16, 4  ;;  %s1669_s12 = smov [#allocation24]   ;;  %s188_s10 = int_to_ptr.hbm [resolvable:$true] %s187_s10 }
  0x2b   :  { %165 = dma.hbm_to_vmem [thread:$0]  %s158_s29, 512, %s160_s1, [#allocation20], %s1654_s21, %s1654_s21, %s1655_s22  }
  0x2c   :  { %s189_s20 = sshll.u32 %s1669_s12, 4  ;;  %s190_s20 = int_to_ptr.vmem [resolvable:$true] %s189_s20 }
  0x2d   :  { %195 = dma.hbm_to_vmem [thread:$0]  %s188_s10, 512, %s190_s20, [#allocation23], %s1654_s21, %s1654_s21, %s1655_s22  }
  0x2e   :  { %1637 = dma.done.wait [#allocation5], 128  }
  0x2f   :  { %1638 = vsyncadd [#allocation5], 4294967168 }
  0x30   :  { %1639 = dma.done.wait [#allocation8], 320  }
  0x31   :  { %1640 = vsyncadd [#allocation8], 4294966976 }
  0x32   :  { %1641 = dma.done.wait [#allocation11], 272  }
  0x33   :  { %1642 = vsyncadd [#allocation11], 4294967024 }
  0x34   :  { %1643 = dma.done.wait [#allocation14], 144  }
  0x35   :  { %1644 = vsyncadd [#allocation14], 4294967152 }
  0x36   :  { %1645 = dma.done.wait [#allocation17], 528  }
  0x37   :  { %1646 = vsyncadd [#allocation17], 4294966768 }
  0x38   :  { %1647 = dma.done.wait [#allocation20], 528  }
  0x39   :  { %1648 = vsyncadd [#allocation20], 4294966768 }
  0x3a   :  { %1649 = dma.done.wait [#allocation23], 1024  }
  0x3b   :  { %1650 = vsyncadd [#allocation23], 4294966272  ;;  %vm337_vm0 = vcmask 1043456   ;;  %v271_v0 = vld [vmem:[#allocation9] sm:$0xf]  ;;  %vm312_vm1 = vcmask 64512  }
  0x3c   :  { %v339_v1 = vsel %vm337_vm0, %v271_v0, 0  ;;  %s1998_s9 = sld [smem:[#allocation34_spill]]  ;;  %vm406_vm2 = vcmask 257024   ;;  %v1255_v58 = vld [vmem:[#allocation12 + $0x8] sm:$0xff]  ;;  %v1254_v59 = vld [vmem:[#allocation12] sm:$0xff]  ;;  %vm606_vm3 = vcmask 261120  }
  0x3d   :  { %348 = vmatpush.bf16.msra.mxu0 %v339_v1  ;;  %s1999_s1 = sld [smem:[#allocation35_spill]]  ;;  %696 = vmatpush.bf16.msra.mxu2 %v1255_v58  ;;  %v1892_v60 = vld [vmem:[#allocation10] ss:$0 sm:$0xff]  ;;  %vm931_vm6 = vcmask 130048   ;;  %s1075_s2 = sshll.u32 %s1991_s18, 4  ;;  %s1076_s2 = int_to_ptr.hbm [resolvable:$true] %s1075_s2 }
  0x41   :  { %697 = vmatpush.bf16.msra.mxu2 %v1254_v59 }
  0x42   :  { %v1230_v2 = vld [vmem:[%s1998_s9] sm:$0xff]  ;;  %v1231_v3 = vld [vmem:[%s1998_s9 + $0x8] sm:$0xff]  ;;  %v1232_v4 = vld [vmem:[%s1998_s9 + $0x10] sm:$0xff] }
  0x43   :  { %1126 = vmatmul.msk.bf16.vlgmr.msra.gmra.mxu0 %vm312_vm1, %v1230_v2  ;;  %v1233_v5 = vld [vmem:[%s1998_s9 + $0x18] sm:$0xff]  ;;  %v1234_v6 = vld [vmem:[%s1998_s9 + $0x20] sm:$0xff]  ;;  %v1235_v7 = vld [vmem:[%s1998_s9 + $0x28] sm:$0xff] }
  0x44   :  { %v1236_v8 = vld [vmem:[%s1998_s9 + $0x30] sm:$0xff]  ;;  %v1237_v9 = vld [vmem:[%s1998_s9 + $0x38] sm:$0xff]  ;;  %v1238_v50 = vld [vmem:[%s1999_s1] sm:$0xff] }
  0x45   :  { %v1239_v51 = vld [vmem:[%s1999_s1 + $0x8] sm:$0xff]  ;;  %v1240_v52 = vld [vmem:[%s1999_s1 + $0x10] sm:$0xff]  ;;  %v1241_v53 = vld [vmem:[%s1999_s1 + $0x18] sm:$0xff] }
  0x46   :  { %v1242_v54 = vld [vmem:[%s1999_s1 + $0x20] sm:$0xff]  ;;  %v1243_v55 = vld [vmem:[%s1999_s1 + $0x28] sm:$0xff]  ;;  %v1244_v56 = vld [vmem:[%s1999_s1 + $0x30] sm:$0xff] }
  0x47   :  { %v1245_v57 = vld [vmem:[%s1999_s1 + $0x38] sm:$0xff] }
  0x53   :  { %1127 = vmatmul.msk.bf16.gmra.mxu0 %vm312_vm1, %v1231_v3 }
  0x63   :  { %1128 = vmatmul.msk.bf16.gmra.mxu0 %vm312_vm1, %v1232_v4 }
  0x73   :  { %1129 = vmatmul.msk.bf16.gmra.mxu0 %vm312_vm1, %v1233_v5 }
  0x83   :  { %1130 = vmatmul.msk.bf16.gmra.mxu0 %vm312_vm1, %v1234_v6 }
  0x93   :  { %1131 = vmatmul.msk.bf16.gmra.mxu0 %vm312_vm1, %v1235_v7 }
  0xa3   :  { %1132 = vmatmul.msk.bf16.gmra.mxu0 %vm312_vm1, %v1236_v8 }
  0xb3   :  { %1133 = vmatmul.msk.bf16.gmra.mxu0 %vm312_vm1, %v1237_v9 }
  0xc0   :  { %v350_v10 = vpop.f32.mrf.mxu0 }
  0xc1   :  { %v390_v11 = vpack.c.bf16 %v350_v10, %v350_v10 }
  0xc3   :  { %407 = vst.msk [vmem:[#allocation3] sm:$0xf] %vm406_vm2, %v390_v11 }
  0xc8   :  { %v352_v12 = vpop.f32.mrf.mxu0 }
  0xc9   :  { %v391_v13 = vpack.c.bf16 %v352_v12, %v352_v12 }
  0xcb   :  { %408 = vst.msk [vmem:[#allocation3 + $0x4] sm:$0xf] %vm406_vm2, %v391_v13 }
  0xd0   :  { %v355_v14 = vpop.f32.mrf.mxu0 }
  0xd1   :  { %v392_v15 = vpack.c.bf16 %v355_v14, %v355_v14 }
  0xd2   :  { %v1246_v49 = vld [vmem:[#allocation3] sm:$0xff] }
  0xd3   :  { %409 = vst.msk [vmem:[#allocation3 + $0x8] sm:$0xf] %vm406_vm2, %v392_v15 }
  0xd8   :  { %v357_v16 = vpop.f32.mrf.mxu0 }
  0xd9   :  { %v393_v17 = vpack.c.bf16 %v357_v16, %v357_v16 }
  0xdb   :  { %410 = vst.msk [vmem:[#allocation3 + $0xc] sm:$0xf] %vm406_vm2, %v393_v17 }
  0xe0   :  { %v360_v18 = vpop.f32.mrf.mxu0 }
  0xe1   :  { %v394_v19 = vpack.c.bf16 %v360_v18, %v360_v18 }
  0xe2   :  { %v1247_v48 = vld [vmem:[#allocation3 + $0x8] sm:$0xff] }
  0xe3   :  { %411 = vst.msk [vmem:[#allocation3 + $0x10] sm:$0xf] %vm406_vm2, %v394_v19 }
  0xe8   :  { %v362_v20 = vpop.f32.mrf.mxu0 }
  0xe9   :  { %v395_v21 = vpack.c.bf16 %v362_v20, %v362_v20 }
  0xeb   :  { %412 = vst.msk [vmem:[#allocation3 + $0x14] sm:$0xf] %vm406_vm2, %v395_v21 }
  0xf0   :  { %v365_v22 = vpop.f32.mrf.mxu0 }
  0xf1   :  { %v396_v23 = vpack.c.bf16 %v365_v22, %v365_v22 }
  0xf2   :  { %v1248_v47 = vld [vmem:[#allocation3 + $0x10] sm:$0xff] }
  0xf3   :  { %413 = vst.msk [vmem:[#allocation3 + $0x18] sm:$0xf] %vm406_vm2, %v396_v23 }
  0xf8   :  { %v367_v24 = vpop.f32.mrf.mxu0 }
  0xf9   :  { %v397_v25 = vpack.c.bf16 %v367_v24, %v367_v24 }
  0xfb   :  { %414 = vst.msk [vmem:[#allocation3 + $0x1c] sm:$0xf] %vm406_vm2, %v397_v25 }
 0x100   :  { %v370_v26 = vpop.f32.mrf.mxu0 }
 0x101   :  { %v398_v27 = vpack.c.bf16 %v370_v26, %v370_v26 }
 0x102   :  { %v1249_v46 = vld [vmem:[#allocation3 + $0x18] sm:$0xff] }
 0x103   :  { %415 = vst.msk [vmem:[#allocation3 + $0x20] sm:$0xf] %vm406_vm2, %v398_v27 }
 0x108   :  { %v372_v28 = vpop.f32.mrf.mxu0 }
 0x109   :  { %v399_v29 = vpack.c.bf16 %v372_v28, %v372_v28 }
 0x10b   :  { %416 = vst.msk [vmem:[#allocation3 + $0x24] sm:$0xf] %vm406_vm2, %v399_v29 }
 0x110   :  { %v375_v30 = vpop.f32.mrf.mxu0 }
 0x111   :  { %v400_v31 = vpack.c.bf16 %v375_v30, %v375_v30 }
 0x112   :  { %v1250_v45 = vld [vmem:[#allocation3 + $0x20] sm:$0xff] }
 0x113   :  { %417 = vst.msk [vmem:[#allocation3 + $0x28] sm:$0xf] %vm406_vm2, %v400_v31 }
 0x118   :  { %v377_v32 = vpop.f32.mrf.mxu0 }
 0x119   :  { %v401_v33 = vpack.c.bf16 %v377_v32, %v377_v32 }
 0x11b   :  { %418 = vst.msk [vmem:[#allocation3 + $0x2c] sm:$0xf] %vm406_vm2, %v401_v33 }
 0x120   :  { %v380_v34 = vpop.f32.mrf.mxu0 }
 0x121   :  { %v402_v35 = vpack.c.bf16 %v380_v34, %v380_v34 }
 0x122   :  { %v1251_v44 = vld [vmem:[#allocation3 + $0x28] sm:$0xff] }
 0x123   :  { %419 = vst.msk [vmem:[#allocation3 + $0x30] sm:$0xf] %vm406_vm2, %v402_v35 }
 0x128   :  { %v382_v36 = vpop.f32.mrf.mxu0 }
 0x129   :  { %v403_v37 = vpack.c.bf16 %v382_v36, %v382_v36 }
 0x12b   :  { %420 = vst.msk [vmem:[#allocation3 + $0x34] sm:$0xf] %vm406_vm2, %v403_v37 }
 0x130   :  { %v385_v38 = vpop.f32.mrf.mxu0 }
 0x131   :  { %v404_v39 = vpack.c.bf16 %v385_v38, %v385_v38 }
 0x132   :  { %v1252_v43 = vld [vmem:[#allocation3 + $0x30] sm:$0xff] }
 0x133   :  { %421 = vst.msk [vmem:[#allocation3 + $0x38] sm:$0xf] %vm406_vm2, %v404_v39 }
 0x138   :  { %v387_v40 = vpop.f32.mrf.mxu0 }
 0x139   :  { %v405_v41 = vpack.c.bf16 %v387_v40, %v387_v40 }
 0x13b   :  { %422 = vst.msk [vmem:[#allocation3 + $0x3c] sm:$0xf] %vm406_vm2, %v405_v41 }
 0x142   :  { %v1253_v42 = vld [vmem:[#allocation3 + $0x38] sm:$0xff] }
 0x143   :  { %556 = vmatpush.bf16.msrb.mxu0 %v1253_v42  ;;  %1261 = vmatpush.bf16.msra.mxu1 %v1253_v42 }
 0x147   :  { %557 = vmatpush.bf16.msrb.mxu0 %v1252_v43  ;;  %1262 = vmatpush.bf16.msra.mxu1 %v1252_v43 }
 0x14b   :  { %558 = vmatpush.bf16.msrb.mxu0 %v1251_v44  ;;  %1263 = vmatpush.bf16.msra.mxu1 %v1251_v44 }
 0x14f   :  { %559 = vmatpush.bf16.msrb.mxu0 %v1250_v45  ;;  %1264 = vmatpush.bf16.msra.mxu1 %v1250_v45 }
 0x153   :  { %560 = vmatpush.bf16.msrb.mxu0 %v1249_v46  ;;  %1265 = vmatpush.bf16.msra.mxu1 %v1249_v46 }
 0x157   :  { %561 = vmatpush.bf16.msrb.mxu0 %v1248_v47  ;;  %1266 = vmatpush.bf16.msra.mxu1 %v1248_v47 }
 0x15b   :  { %562 = vmatpush.bf16.msrb.mxu0 %v1247_v48  ;;  %1267 = vmatpush.bf16.msra.mxu1 %v1247_v48 }
 0x15f   :  { %563 = vmatpush.bf16.msrb.mxu0 %v1246_v49  ;;  %1268 = vmatpush.bf16.msra.mxu1 %v1246_v49 }
 0x162   :  { %564 = vmatmul.bf16.vlgmr.msrb.gmra.mxu0 %v1238_v50  ;;  %569 = vmatmul.bf16.vlgmr.msra.gmra.mxu1 %v1239_v51 }
 0x172   :  { %574 = vmatmul.bf16.gmra.mxu1 %v1240_v52 }
 0x182   :  { %579 = vmatmul.bf16.gmra.mxu1 %v1241_v53 }
 0x192   :  { %584 = vmatmul.bf16.gmra.mxu1 %v1242_v54 }
 0x1a2   :  { %589 = vmatmul.bf16.gmra.mxu1 %v1243_v55 }
 0x1b2   :  { %594 = vmatmul.bf16.gmra.mxu1 %v1244_v56 }
 0x1c2   :  { %599 = vmatmul.bf16.gmra.mxu1 %v1245_v57 }
 0x1df   :  { %v565_v61 = vpop.f32.mrf.mxu0  ;;  %v570_v62 = vpop.f32.mrf.mxu1 }
 0x1e0   :  { %v566_v63 = vadd.f32 %v1892_v60, %v565_v61  ;;  %v571_v0 = vadd.f32 %v1892_v60, %v570_v62 }
 0x1e2   :  { %607 = vst.msk [vmem:[#allocation2] sm:$0xff] %vm606_vm3, %v566_v63 }
 0x1e3   :  { %609 = vst.msk [vmem:[#allocation2 + $0x10] sm:$0xff] %vm606_vm3, %v571_v0 }
 0x1e7   :  { %v567_v1 = vpop.f32.mrf.mxu0  ;;  %v572_v2 = vpop.f32.mrf.mxu1 }
 0x1e8   :  { %v568_v3 = vadd.f32 %v1892_v60, %v567_v1  ;;  %v573_v4 = vadd.f32 %v1892_v60, %v572_v2 }
 0x1e9   :  { %v1903_v7 = vld [vmem:[#allocation2] sm:$0xff] }
 0x1ea   :  { %608 = vst.msk [vmem:[#allocation2 + $0x8] sm:$0xff] %vm606_vm3, %v568_v3  ;;  %v628_v12 = vld [vmem:[#allocation2 + $0x10] sm:$0xff] }
 0x1eb   :  { %610 = vst.msk [vmem:[#allocation2 + $0x18] sm:$0xff] %vm606_vm3, %v573_v4 }
 0x1ef   :  { %v575_v5 = vpop.f32.mrf.mxu1 }
 0x1f0   :  { %v576_v6 = vadd.f32 %v1892_v60, %v575_v5 }
 0x1f1   :  { %v1905_v8 = vld [vmem:[#allocation2 + $0x8] sm:$0xff] }
 0x1f2   :  { %v642_v9 = vpack.c.bf16 %v1905_v8, %v1903_v7  ;;  %611 = vst.msk [vmem:[#allocation2 + $0x20] sm:$0xff] %vm606_vm3, %v576_v6  ;;  %v629_v13 = vld [vmem:[#allocation2 + $0x18] sm:$0xff] }
 0x1f3   :  { %v643_v16 = vpack.c.bf16 %v629_v13, %v628_v12 }
 0x1f4   :  { %1206 = vmatmul.msk.bf16.vlgmr.msra.gmra.mxu2 %vm606_vm3, %v642_v9 }
 0x1f7   :  { %v577_v10 = vpop.f32.mrf.mxu1 }
 0x1f8   :  { %v578_v11 = vadd.f32 %v1892_v60, %v577_v10 }
 0x1f9   :  { %v630_v19 = vld [vmem:[#allocation2 + $0x20] sm:$0xff] }
 0x1fa   :  { %612 = vst.msk [vmem:[#allocation2 + $0x28] sm:$0xff] %vm606_vm3, %v578_v11 }
 0x1ff   :  { %v580_v14 = vpop.f32.mrf.mxu1 }
 0x200   :  { %v581_v15 = vadd.f32 %v1892_v60, %v580_v14 }
 0x201   :  { %v631_v20 = vld [vmem:[#allocation2 + $0x28] sm:$0xff] }
 0x202   :  { %613 = vst.msk [vmem:[#allocation2 + $0x30] sm:$0xff] %vm606_vm3, %v581_v15  ;;  %v644_v23 = vpack.c.bf16 %v631_v20, %v630_v19  ;;  %v783_v15 = vld [vmem:[#allocation15] sm:$0xff] }
 0x203   :  { %v827_v20 = vld [vmem:[#allocation18 + $0x18] sm:$0xff] }
 0x204   :  { %1207 = vmatmul.msk.bf16.gmra.mxu2 %vm606_vm3, %v643_v16  ;;  %v1256_v16 = vld [vmem:[#allocation4] sm:$0xff] }
 0x207   :  { %v582_v17 = vpop.f32.mrf.mxu1 }
 0x208   :  { %v583_v18 = vadd.f32 %v1892_v60, %v582_v17  ;;  %v1258_v17 = vld [vmem:[%s1998_s9] sm:$0xff]  }
 0x209   :  { %v632_v26 = vld [vmem:[#allocation2 + $0x30] sm:$0xff]  ;;  %v1260_v19 = vunpack.c.h.bf16 %v1258_v17 }
 0x20a   :  { %614 = vst.msk [vmem:[#allocation2 + $0x38] sm:$0xff] %vm606_vm3, %v583_v18  ;;  %v1259_v18 = vunpack.c.l.bf16 %v1258_v17  ;;  %v1292_v17 = vld [vmem:[%s1990_s17] ss:$0 sm:$0xff]  ;;  %s1670_s17 = smov [#allocation25]  }
 0x20b   :  { %s1073_s8 = sshll.u32 %s1670_s17, 4  ;;  %s1074_s8 = int_to_ptr.vmem [resolvable:$true] %s1073_s8 }
 0x20f   :  { %v585_v21 = vpop.f32.mrf.mxu1 }
 0x210   :  { %v586_v22 = vadd.f32 %v1892_v60, %v585_v21  ;;  %v826_v21 = vld [vmem:[#allocation18 + $0x10] sm:$0xff] }
 0x211   :  { %v633_v27 = vld [vmem:[#allocation2 + $0x38] sm:$0xff] }
 0x212   :  { %615 = vst.msk [vmem:[#allocation2 + $0x40] sm:$0xff] %vm606_vm3, %v586_v22  ;;  %v645_v30 = vpack.c.bf16 %v633_v27, %v632_v26  ;;  %v825_v22 = vld [vmem:[#allocation18 + $0x8] sm:$0xff] }
 0x214   :  { %1208 = vmatmul.msk.bf16.gmra.mxu2 %vm606_vm3, %v644_v23  ;;  %v824_v23 = vld [vmem:[#allocation18] sm:$0xff] }
 0x217   :  { %v587_v24 = vpop.f32.mrf.mxu1 }
 0x218   :  { %v588_v25 = vadd.f32 %v1892_v60, %v587_v24  ;;  %v868_v24 = vld [vmem:[#allocation22 + $0x18] sm:$0xff] }
 0x219   :  { %v634_v33 = vld [vmem:[#allocation2 + $0x40] sm:$0xff] }
 0x21a   :  { %616 = vst.msk [vmem:[#allocation2 + $0x48] sm:$0xff] %vm606_vm3, %v588_v25  ;;  %v867_v25 = vld [vmem:[#allocation22 + $0x10] sm:$0xff] }
 0x21f   :  { %v590_v28 = vpop.f32.mrf.mxu1 }
 0x220   :  { %v591_v29 = vadd.f32 %v1892_v60, %v590_v28  ;;  %v1289_v28 = vld [vmem:[#allocation16] ss:$0 sm:$0xff] }
 0x221   :  { %v635_v34 = vld [vmem:[#allocation2 + $0x48] sm:$0xff] }
 0x222   :  { %617 = vst.msk [vmem:[#allocation2 + $0x50] sm:$0xff] %vm606_vm3, %v591_v29  ;;  %v646_v37 = vpack.c.bf16 %v635_v34, %v634_v33 }
 0x224   :  { %1209 = vmatmul.msk.bf16.gmra.mxu2 %vm606_vm3, %v645_v30 }
 0x227   :  { %v592_v31 = vpop.f32.mrf.mxu1 }
 0x228   :  { %v593_v32 = vadd.f32 %v1892_v60, %v592_v31 }
 0x229   :  { %v636_v40 = vld [vmem:[#allocation2 + $0x50] sm:$0xff] }
 0x22a   :  { %618 = vst.msk [vmem:[#allocation2 + $0x58] sm:$0xff] %vm606_vm3, %v593_v32 }
 0x22f   :  { %v595_v35 = vpop.f32.mrf.mxu1 }
 0x230   :  { %v596_v36 = vadd.f32 %v1892_v60, %v595_v35 }
 0x231   :  { %v637_v41 = vld [vmem:[#allocation2 + $0x58] sm:$0xff] }
 0x232   :  { %619 = vst.msk [vmem:[#allocation2 + $0x60] sm:$0xff] %vm606_vm3, %v596_v36  ;;  %v647_v44 = vpack.c.bf16 %v637_v41, %v636_v40  ;;  %v863_v40 = vld [vmem:[#allocation21 + $0x10] sm:$0xff]  ;;  %v862_v41 = vld [vmem:[#allocation21 + $0x8] sm:$0xff] }
 0x234   :  { %1210 = vmatmul.msk.bf16.gmra.mxu2 %vm606_vm3, %v646_v37  ;;  %v866_v37 = vld [vmem:[#allocation22 + $0x8] sm:$0xff] }
 0x237   :  { %v597_v38 = vpop.f32.mrf.mxu1 }
 0x238   :  { %v598_v39 = vadd.f32 %v1892_v60, %v597_v38  ;;  %v865_v38 = vld [vmem:[#allocation22] sm:$0xff] }
 0x239   :  { %v638_v47 = vld [vmem:[#allocation2 + $0x60] sm:$0xff] }
 0x23a   :  { %620 = vst.msk [vmem:[#allocation2 + $0x68] sm:$0xff] %vm606_vm3, %v598_v39  ;;  %v864_v39 = vld [vmem:[#allocation21 + $0x18] sm:$0xff] }
 0x23f   :  { %v600_v42 = vpop.f32.mrf.mxu1 }
 0x240   :  { %v601_v43 = vadd.f32 %v1892_v60, %v600_v42  ;;  %v861_v42 = vld [vmem:[#allocation21] sm:$0xff] }
 0x241   :  { %v639_v48 = vld [vmem:[#allocation2 + $0x68] sm:$0xff] }
 0x242   :  { %621 = vst.msk [vmem:[#allocation2 + $0x70] sm:$0xff] %vm606_vm3, %v601_v43  ;;  %v648_v49 = vpack.c.bf16 %v639_v48, %v638_v47  ;;  %v1290_v43 = vld [vmem:[#allocation19] ss:$0 sm:$0xff]  ;;  %v929_v47 = vld [vmem:[%s1987_s14] sm:$0xff]  ;;  %v1288_v48 = vld [vmem:[#allocation13] ss:$0 sm:$0xff] }
 0x244   :  { %1211 = vmatmul.msk.bf16.gmra.mxu2 %vm606_vm3, %v647_v44 }
 0x247   :  { %v602_v45 = vpop.f32.mrf.mxu1 }
 0x248   :  { %v603_v46 = vadd.f32 %v1892_v60, %v602_v45 }
 0x249   :  { %v640_v50 = vld [vmem:[#allocation2 + $0x70] sm:$0xff] }
 0x24a   :  { %622 = vst.msk [vmem:[#allocation2 + $0x78] sm:$0xff] %vm606_vm3, %v603_v46  ;;  %v930_v46 = vld [vmem:[%s1987_s14 + $0x8] sm:$0xff] }
 0x251   :  { %v641_v51 = vld [vmem:[#allocation2 + $0x78] sm:$0xff] }
 0x252   :  { %v649_v52 = vpack.c.bf16 %v641_v51, %v640_v50 }
 0x254   :  { %1212 = vmatmul.msk.bf16.gmra.mxu2 %vm606_vm3, %v648_v49 }
 0x264   :  { %1213 = vmatmul.msk.bf16.gmra.mxu2 %vm606_vm3, %v649_v52 }
 0x277   :  { %v699_v53 = vpop.f32.mrf.mxu2 }
 0x27f   :  { %v701_v54 = vpop.f32.mrf.mxu2 }
 0x280   :  { %v741_v55 = vpack.c.bf16 %v701_v54, %v699_v53 }
 0x287   :  { %v704_v56 = vpop.f32.mrf.mxu2 }
 0x28f   :  { %v706_v57 = vpop.f32.mrf.mxu2 }
 0x290   :  { %v742_v58 = vpack.c.bf16 %v706_v57, %v704_v56  ;;  %v927_v57 = vld [vmem:[#allocation7] sm:$0xff] }
 0x297   :  { %v709_v59 = vpop.f32.mrf.mxu2 }
 0x29f   :  { %v711_v60 = vpop.f32.mrf.mxu2 }
 0x2a0   :  { %v743_v61 = vpack.c.bf16 %v711_v60, %v709_v59  ;;  %v978_v60 = vld [vmem:[#allocation24 + $0x18] sm:$0xff] }
 0x2a7   :  { %v714_v62 = vpop.f32.mrf.mxu2 }
 0x2af   :  { %v716_v63 = vpop.f32.mrf.mxu2 }
 0x2b0   :  { %v744_v0 = vpack.c.bf16 %v716_v63, %v714_v62  ;;  %v975_v62 = vld [vmem:[#allocation24] sm:$0xff] }
 0x2b7   :  { %v719_v1 = vpop.f32.mrf.mxu2 }
 0x2bf   :  { %v721_v2 = vpop.f32.mrf.mxu2 }
 0x2c0   :  { %v745_v14 = vpack.c.bf16 %v721_v2, %v719_v1  ;;  %v1291_v2 = vld [vmem:[%s1988_s15] ss:$0 sm:$0xff] }
 0x2c7   :  { %v724_v3 = vpop.f32.mrf.mxu2 }
 0x2cf   :  { %v726_v4 = vpop.f32.mrf.mxu2 }
 0x2d0   :  { %v746_v13 = vpack.c.bf16 %v726_v4, %v724_v3 }
 0x2d7   :  { %v729_v5 = vpop.f32.mrf.mxu2 }
 0x2df   :  { %v731_v6 = vpop.f32.mrf.mxu2 }
 0x2e0   :  { %v747_v12 = vpack.c.bf16 %v731_v6, %v729_v5 }
 0x2e7   :  { %v734_v9 = vpop.f32.mrf.mxu2 }
 0x2ef   :  { %v736_v10 = vpop.f32.mrf.mxu2 }
 0x2f0   :  { %v748_v11 = vpack.c.bf16 %v736_v10, %v734_v9 }
 0x2f2   :  { %759 = vmatpush.bf16.msra.mxu3 %v748_v11 }
 0x2f6   :  { %760 = vmatpush.bf16.msra.mxu3 %v747_v12 }
 0x2fa   :  { %761 = vmatpush.bf16.msra.mxu3 %v746_v13 }
 0x2fe   :  { %762 = vmatpush.bf16.msra.mxu3 %v745_v14 }
 0x302   :  { %763 = vmatpush.bf16.msra.mxu3 %v744_v0 }
 0x306   :  { %764 = vmatpush.bf16.msra.mxu3 %v743_v61  ;;  %v977_v61 = vld [vmem:[#allocation24 + $0x10] sm:$0xff] }
 0x30a   :  { %765 = vmatpush.bf16.msra.mxu3 %v742_v58  ;;  %v928_v58 = vld [vmem:[#allocation7 + $0x8] sm:$0xff] }
 0x30e   :  { %766 = vmatpush.bf16.msra.mxu3 %v741_v55 }
 0x311   :  { %767 = vmatmul.bf16.vlgmr.msra.gmra.mxu3 %v1256_v16  ;;  %v1018_v16 = vlaneseq }
 0x312   :  { %810 = vmatpush.msrb.mxu3 %v783_v15 }
 0x314   :  { %850 = vmatpush.msra.mxu3 %v827_v20 }
 0x316   :  { %851 = vmatpush.msra.mxu3 %v826_v21 }
 0x318   :  { %852 = vmatpush.msra.mxu3 %v825_v22 }
 0x31a   :  { %853 = vmatpush.msra.mxu3 %v824_v23 }
 0x321   :  { %1218 = vmatmul.msk.f32.vlgmr.msrb.gmra.mxu3 %vm312_vm1, %v1259_v18  ;;  %v1019_v18 = vand.u32 127, %v1018_v16 }
 0x322   :  { %887 = vmatpush.msrb.mxu3 %v868_v24 }
 0x323   :  { %vm1020_vm10 = vcmp.lt.s32.totalorder %v1019_v18, 2 }
 0x324   :  { %888 = vmatpush.msrb.mxu3 %v867_v25 }
 0x326   :  { %889 = vmatpush.msrb.mxu3 %v866_v37 }
 0x328   :  { %890 = vmatpush.msrb.mxu3 %v865_v38 }
 0x329   :  { %1219 = vmatmul.msk.f32.gmra.mxu3 %vm312_vm1, %v1260_v19 }
 0x394   :  { %v768_v26 = vpop.f32.mrf.mxu3 }
 0x395   :  { %v769_v50 = vadd.f32 %v1288_v48, %v768_v26 }
 0x397   :  { %v775_v52 = vadd.f32 %v769_v50, %v1903_v7  ;;  %v976_v7 = vld [vmem:[#allocation24 + $0x8] sm:$0xff] }
 0x399   :  { %v777_v53 = vmul.f32 0.5, %v775_v52 }
 0x39c   :  { %v770_v27 = vpop.f32.mrf.mxu3 }
 0x39d   :  { %v771_v54 = vadd.f32 %v1288_v48, %v770_v27 }
 0x39f   :  { %v776_v55 = vadd.f32 %v771_v54, %v1905_v8 }
 0x3a1   :  { %v778_v56 = vmul.f32 0.5, %v776_v55 }
 0x3a4   :  { %v812_v29 = vpop.f32.mrf.mxu3 }
 0x3a5   :  { %v813_v30 = vadd.f32 %v1289_v28, %v812_v29 }
 0x3a7   :  { %vm818_vm4 = vcmp.gt.f32.partialorder %v813_v30, 0.0  ;;  %v820_v31 = vmul.f32 0.01, %v813_v30 }
 0x3a9   :  { %v822_v32 = vsel %vm818_vm4, %v813_v30, %v820_v31 }
 0x3aa   :  { %1220 = vmatmul.msk.f32.vlgmr.msra.gmra.mxu3 %vm606_vm3, %v822_v32 }
 0x3ab   :  { %916 = vmatpush.msra.mxu3 %v864_v39 }
 0x3ac   :  { %v815_v33 = vpop.f32.mrf.mxu3 }
 0x3ad   :  { %v816_v34 = vadd.f32 %v1289_v28, %v815_v33  ;;  %917 = vmatpush.msra.mxu3 %v863_v40 }
 0x3af   :  { %v821_v35 = vmul.f32 0.01, %v816_v34  ;;  %vm819_vm5 = vcmp.gt.f32.partialorder %v816_v34, 0.0  ;;  %918 = vmatpush.msra.mxu3 %v862_v41 }
 0x3b1   :  { %v823_v36 = vsel %vm819_vm5, %v816_v34, %v821_v35  ;;  %919 = vmatpush.msra.mxu3 %v861_v42 }
 0x3b2   :  { %1221 = vmatmul.msk.f32.gmra.mxu3 %vm606_vm3, %v823_v36 }
 0x42d   :  { %v855_v44 = vpop.f32.mrf.mxu3 }
 0x42e   :  { %v856_v45 = vadd.f32 %v1290_v43, %v855_v44 }
 0x430   :  { %1222 = vmatmul.msk.f32.vlgmr.msrb.gmra.mxu3 %vm606_vm3, %v856_v45 }
 0x431   :  { %952 = vmatpush.msrb.mxu3 %v930_v46 }
 0x433   :  { %953 = vmatpush.msrb.mxu3 %v929_v47 }
 0x435   :  { %v858_v49 = vpop.f32.mrf.mxu3 }
 0x436   :  { %v859_v51 = vadd.f32 %v1290_v43, %v858_v49 }
 0x438   :  { %1223 = vmatmul.msk.f32.gmra.mxu3 %vm606_vm3, %v859_v51 }
 0x440   :  { %1224 = vmatmul.msk.f32.vlgmr.msra.gmra.mxu3 %vm606_vm3, %v777_v53 }
 0x441   :  { %1001 = vmatpush.msra.mxu3 %v978_v60 }
 0x443   :  { %1002 = vmatpush.msra.mxu3 %v977_v61 }
 0x445   :  { %1003 = vmatpush.msra.mxu3 %v976_v7 }
 0x447   :  { %1004 = vmatpush.msra.mxu3 %v975_v62 }
 0x448   :  { %1225 = vmatmul.msk.f32.gmra.mxu3 %vm606_vm3, %v778_v56 }
 0x450   :  { %1226 = vmatmul.msk.f32.vlgmr.msrb.gmra.mxu3 %vm931_vm6, %v927_v57 }
 0x458   :  { %1227 = vmatmul.msk.f32.gmra.mxu3 %vm931_vm6, %v928_v58 }
 0x4b3   :  { %v892_v59 = vpop.f32.mrf.mxu3 }
 0x4bb   :  { %v895_v63 = vpop.f32.mrf.mxu3 }
 0x4c3   :  { %v921_v0 = vpop.f32.mrf.mxu3 }
 0x4c4   :  { %v922_v1 = vadd.f32 %v921_v0, %v892_v59 }
 0x4cb   :  { %v924_v8 = vpop.f32.mrf.mxu3 }
 0x4cc   :  { %v925_v9 = vadd.f32 %v924_v8, %v895_v63 }
 0x4d3   :  { %v955_v3 = vpop.f32.mrf.mxu3 }
 0x4d4   :  { %v961_v4 = vadd.f32 %v955_v3, %v922_v1 }
 0x4d6   :  { %v967_v5 = vadd.f32 %v1291_v2, %v961_v4 }
 0x4d8   :  { %vm969_vm7 = vcmp.gt.f32.partialorder %v967_v5, 0.0  ;;  %v971_v6 = vmul.f32 0.01, %v967_v5 }
 0x4da   :  { %v973_v10 = vsel %vm969_vm7, %v967_v5, %v971_v6 }
 0x4db   :  { %v958_v11 = vpop.f32.mrf.mxu3  ;;  %1228 = vmatmul.msk.f32.vlgmr.msra.gmra.mxu3 %vm606_vm3, %v973_v10 }
 0x4dc   :  { %v962_v12 = vadd.f32 %v958_v11, %v925_v9 }
 0x4de   :  { %v968_v13 = vadd.f32 %v1291_v2, %v962_v12 }
 0x4e0   :  { %vm970_vm8 = vcmp.gt.f32.partialorder %v968_v13, 0.0  ;;  %v972_v14 = vmul.f32 0.01, %v968_v13 }
 0x4e2   :  { %v974_v15 = vsel %vm970_vm8, %v968_v13, %v972_v14 }
 0x4e3   :  { %1229 = vmatmul.msk.f32.gmra.mxu3 %vm606_vm3, %v974_v15 }
 0x55e   :  { %v1006_v19 = vpop.f32.mrf.mxu3 }
 0x55f   :  { %v1007_v20 = vadd.f32 %v1292_v17, %v1006_v19 }
 0x561   :  { %v1014_v21 = vmul.f32 0.01, %v1007_v20  ;;  %vm1012_vm9 = vcmp.gt.f32.partialorder %v1007_v20, 0.0 }
 0x563   :  { %v1016_v22 = vsel %vm1012_vm9, %v1007_v20, %v1014_v21 }
 0x564   :  { %v1021_v23 = vsel %vm1020_vm10, %v1016_v22, -inf }
 0x565   :  { %1023 = vmax.xlane.f32.xlu0 %v1021_v23 }
 0x566   :  { %v1009_v24 = vpop.f32.mrf.mxu3 }
 0x567   :  { %v1010_v25 = vadd.f32 %v1292_v17, %v1009_v24 }
 0x569   :  { %v1015_v26 = vmul.f32 0.01, %v1010_v25  ;;  %vm1013_vm11 = vcmp.gt.f32.partialorder %v1010_v25, 0.0 }
 0x56b   :  { %v1017_v27 = vsel %vm1013_vm11, %v1010_v25, %v1015_v26 }
 0x56c   :  { %v1022_v28 = vsel %vm1020_vm10, %v1017_v27, -inf }
 0x56d   :  { %1025 = vmax.xlane.f32.xlu0 %v1022_v28 }
 0x5d8   :  { %v1024_v29 = vpop.xlane.xlu0 %1023 }
 0x5d9   :  { %v1027_v30 = vsub.f32 %v1021_v23, %v1024_v29 }
 0x5db   :  { %v1029_v31 = vmul.f32 1.442695, %v1027_v30 }
 0x5dd   :  { %1293 = vpow2.f32 %v1029_v31 }
 0x5e0   :  { %v1026_v32 = vpop.xlane.xlu0 %1025 }
 0x5e1   :  { %v1028_v33 = vsub.f32 %v1022_v28, %v1026_v32 }
 0x5e3   :  { %v1294_v34 = vpop.eup %1293  ;;  %v1031_v35 = vmul.f32 1.442695, %v1028_v33 }
 0x5e4   :  { %1033 = vadd.xlane.f32.xlu1 %v1294_v34 }
 0x5e5   :  { %1295 = vpow2.f32 %v1031_v35 }
 0x5eb   :  { %v1296_v36 = vpop.eup %1295 }
 0x5ec   :  { %1035 = vadd.xlane.f32.xlu1 %v1296_v36 }
 0x657   :  { %v1034_v37 = vpop.xlane.xlu1 %1033 }
 0x658   :  { %1297 = vrcp.f32 %v1034_v37  ;;  %v1048_v42 = vand.u32 2147483648, %v1034_v37  ;;  %v1046_v44 = vand.u32 2147483647, %v1034_v37  ;;  %vm1042_vm13 = vweird.f32 %v1034_v37 }
 0x65a   :  { %v1049_v47 = vor.u32 1.1754944e-38, %v1048_v42  ;;  %vm1047_vm15 = vcmp.eq.f32.partialorder %v1046_v44, 8.507059e+37 }
 0x65e   :  { %v1298_v38 = vpop.eup %1297 }
 0x65f   :  { %v1038_v39 = vmul.f32 %v1298_v38, %v1034_v37  ;;  %v1036_v40 = vpop.xlane.xlu1 %1035  ;;  %vm1043_vm12 = vweird.f32 %v1298_v38 }
 0x660   :  { %1299 = vrcp.f32 %v1036_v40  ;;  %vm1044_vm14 = vmor %vm1042_vm13, %vm1043_vm12  ;;  %v1063_v53 = vand.u32 2147483648, %v1036_v40  ;;  %v1061_v55 = vand.u32 2147483647, %v1036_v40  ;;  %vm1057_vm1 = vweird.f32 %v1036_v40 }
 0x661   :  { %v1039_v41 = vsub.f32 1.0, %v1038_v39 }
 0x662   :  { %v1064_v57 = vor.u32 1.1754944e-38, %v1063_v53  ;;  %vm1062_vm3 = vcmp.eq.f32.partialorder %v1061_v55, 8.507059e+37 }
 0x663   :  { %v1040_v43 = vmul.f32 %v1298_v38, %v1039_v41 }
 0x665   :  { %v1041_v45 = vadd.f32 %v1298_v38, %v1040_v43 }
 0x666   :  { %v1300_v46 = vpop.eup %1299 }
 0x667   :  { %v1053_v48 = vmul.f32 %v1300_v46, %v1036_v40  ;;  %v1045_v49 = vsel %vm1044_vm14, %v1298_v38, %v1041_v45  ;;  %vm1058_vm0 = vweird.f32 %v1300_v46 }
 0x668   :  { %v1050_v50 = vsel %vm1047_vm15, %v1049_v47, %v1045_v49  ;;  %vm1059_vm2 = vmor %vm1057_vm1, %vm1058_vm0 }
 0x669   :  { %v1054_v51 = vsub.f32 1.0, %v1053_v48  ;;  %v1051_v52 = vmul.f32 %v1294_v34, %v1050_v50 }
 0x66b   :  { %v1055_v54 = vmul.f32 %v1300_v46, %v1054_v51  ;;  %1067 = vst [vmem:[#allocation25] sm:$0xff] %v1051_v52 }
 0x66d   :  { %v1056_v56 = vadd.f32 %v1300_v46, %v1055_v54 }
 0x66f   :  { %v1060_v58 = vsel %vm1059_vm2, %v1300_v46, %v1056_v56 }
 0x670   :  { %v1065_v59 = vsel %vm1062_vm3, %v1064_v57, %v1060_v58 }
 0x671   :  { %v1066_v60 = vmul.f32 %v1296_v36, %v1065_v59 }
 0x673   :  { %1068 = vst [vmem:[#allocation25 + $0x8] sm:$0xff] %v1066_v60 }
 0x674   :  { %1081 = dma.vmem_to_hbm [thread:$0]  %s1074_s8, 256, %s1076_s2, [#allocation6], %s1654_s21, %s1654_s21, %s1655_s22  }
 0x675   :  { %1651 = dma.done.wait [#allocation6], 256  }
 0x676   :  { %1652 = vsyncadd [#allocation6], 4294967040 }
 0x677   :  { %1086 = vsyncpa [#allocation5], 1 }
 0x678   :  { %1087 = vsyncpa [#allocation8], 1 }
 0x679   :  { %1088 = vsyncpa [#allocation11], 1 }
 0x67a   :  { %1089 = vsyncpa [#allocation14], 1 }
 0x67b   :  { %1090 = vsyncpa [#allocation17], 1 }
 0x67c   :  { %1091 = vsyncpa [#allocation20], 1 }
 0x67d   :  { %1092 = vsyncpa [#allocation23], 1 }
 0x67e   :  { %1093 = vsyncpa [#allocation6], 1 }

</bundles_post_ra>
